<compile_context>
chip_gen: v5e
topology: v5e:2x2
jax: 0.10.0
libtpu: 0.0.40
codegen_flags: <defaults>
</compile_context>

<pallas_src>
import jax
import jax.numpy as jnp
from jax.experimental import pallas as pl
from jax.experimental.pallas import tpu as pltpu


def _round_up(x, m):
    return ((x + m - 1) // m) * m


def _affinity_kernel(x1_ref, x2_ref,
                     w1_ref, b1_ref,
                     w2_ref, b2_ref,
                     w3_ref, b3_ref,
                     out_ref,
                     xcat_ref):
    d1 = x1_ref.shape[1]
    cdt = w1_ref.dtype  # matmul operand dtype (bf16 by default); f32 accumulate

    # Build cat([...]) in a VMEM scratch.  fc1's rows were permuted in the
    # wrapper so the concat order here is [x1, x2, sin(x1), sin(x2), cos(x1),
    # cos(x2)]: two d1-wide stores plus two 2*d1-wide stores, and sin/cos are
    # evaluated once each on the combined (tm, 2*d1) slab.
    xcat_ref[:, 0:d1] = x1_ref[...]
    xcat_ref[:, d1:2 * d1] = x2_ref[...]
    xa = xcat_ref[:, 0:2 * d1]                       # (tm, 2*d1)
    xcat_ref[:, 2 * d1:4 * d1] = jnp.sin(xa)         # [sin(x1), sin(x2)]
    xcat_ref[:, 4 * d1:6 * d1] = jnp.cos(xa)         # [cos(x1), cos(x2)]

    # fc1 + ReLU (the module's `self.tanh` field is nn.ReLU()).
    h1 = jnp.dot(xcat_ref[...].astype(cdt), w1_ref[...],
                 preferred_element_type=jnp.float32) + b1_ref[...]
    h1 = jnp.maximum(h1, 0.0)

    # fc2 + ReLU (output columns zero-padded to 128 in the wrapper).
    h2 = jnp.dot(h1.astype(cdt), w2_ref[...],
                 preferred_element_type=jnp.float32) + b2_ref[...]
    h2 = jnp.maximum(h2, 0.0)

    # fc3 — lane-dense padded output; the padding is sliced off outside.
    out = jnp.dot(h2.astype(cdt), w3_ref[...],
                  preferred_element_type=jnp.float32) + b3_ref[...]
    out_ref[...] = out.astype(out_ref.dtype)


def _pick_batch_tile(B, cap=2048):
    """Batch tile: multiple of 8, capped, >=2 grid steps when B allows, and
    re-balanced so the (zero-padded) last tile isn't mostly padding."""
    b8 = _round_up(max(B, 8), 8)
    tm = min(cap, b8)
    if tm == b8 and b8 >= 16:          # force >=2 steps so megacore can shard
        tm = (tm + 1) // 2
    ntiles = pl.cdiv(b8, tm)
    tm = _round_up(pl.cdiv(b8, ntiles), 8)
    return tm


def prepare_params(params, compute_dtype=jnp.bfloat16):
    """One-time transform of raw (PyTorch-layout-transposed) params for the kernel:
    permute fc1 rows to the kernel's concat order, zero-pad all output dims to
    multiples of 128 (lane-dense), and cast weights to the MXU operand dtype."""
    w1, b1 = params["w1"], jnp.reshape(params["b1"], (1, -1))
    w2, b2 = params["w2"], jnp.reshape(params["b2"], (1, -1))
    w3, b3 = params["w3"], jnp.reshape(params["b3"], (1, -1))

    d_in1, d_h1 = w1.shape
    d1 = d_in1 // 6
    d_h2 = w2.shape[1]
    dim4 = w3.shape[1]

    # Row permutation: original concat order [x1, x2, sin(x1), cos(x1), sin(x2),
    # cos(x2)] -> kernel order [x1, x2, sin(x1), sin(x2), cos(x1), cos(x2)].
    w1p = jnp.concatenate(
        [w1[0:3 * d1], w1[4 * d1:5 * d1], w1[3 * d1:4 * d1], w1[5 * d1:6 * d1]],
        axis=0)

    d_h1_p = _round_up(d_h1, 128)
    d_h2_p = _round_up(d_h2, 128)
    d_out_p = _round_up(dim4, 128)

    w1p = jnp.pad(w1p, ((0, 0), (0, d_h1_p - d_h1)))
    b1p = jnp.pad(b1, ((0, 0), (0, d_h1_p - d_h1)))
    w2p = jnp.pad(w2, ((0, d_h1_p - d_h1), (0, d_h2_p - d_h2)))
    b2p = jnp.pad(b2, ((0, 0), (0, d_h2_p - d_h2)))
    w3p = jnp.pad(w3, ((0, d_h2_p - d_h2), (0, d_out_p - dim4)))
    b3p = jnp.pad(b3, ((0, 0), (0, d_out_p - dim4)))

    return {
        "w1": w1p.astype(compute_dtype), "b1": b1p.astype(jnp.float32),
        "w2": w2p.astype(compute_dtype), "b2": b2p.astype(jnp.float32),
        "w3": w3p.astype(compute_dtype), "b3": b3p.astype(jnp.float32),
        "dim1": d1, "dim4": dim4,
    }


def affinity_merge_forward(x1, x2, prep):
    """Fused forward pass. x1, x2: (B, dim1) float32; prep from prepare_params."""
    B, d1 = x1.shape
    assert d1 == prep["dim1"]
    w1, b1 = prep["w1"], prep["b1"]
    w2, b2 = prep["w2"], prep["b2"]
    w3, b3 = prep["w3"], prep["b3"]
    dim4 = prep["dim4"]

    d_in1 = 6 * d1
    d_h1 = w1.shape[1]
    d_h2 = w2.shape[1]
    d_out = w3.shape[1]

    tm = _pick_batch_tile(B)
    B_pad = _round_up(B, tm)
    if B_pad != B:
        pad = B_pad - B
        x1 = jnp.pad(x1, ((0, pad), (0, 0)))
        x2 = jnp.pad(x2, ((0, pad), (0, 0)))
    grid = (B_pad // tm,)

    # Batch-tiled arrays follow the grid axis; weights/biases stay resident.
    batch_spec = lambda cols: pl.BlockSpec((tm, cols), lambda i: (i, 0))
    resident = lambda a: pl.BlockSpec(a.shape, lambda i: (0, 0))

    flops = 2 * B_pad * (d_in1 * d_h1 + d_h1 * d_h2 + d_h2 * d_out)
    transcendentals = 4 * B_pad * d1  # sin + cos over the (B, 2*d1) slab
    bytes_accessed = (
        x1.size * x1.dtype.itemsize + x2.size * x2.dtype.itemsize
        + B_pad * d_out * 4
        + sum(a.size * a.dtype.itemsize for a in (w1, b1, w2, b2, w3, b3)))

    out = pl.pallas_call(
        _affinity_kernel,
        out_shape=jax.ShapeDtypeStruct((B_pad, d_out), jnp.float32),
        grid=grid,
        in_specs=[
            batch_spec(d1), batch_spec(d1),
            resident(w1), resident(b1),
            resident(w2), resident(b2),
            resident(w3), resident(b3),
        ],
        out_specs=batch_spec(d_out),
        scratch_shapes=[pltpu.VMEM((tm, d_in1), jnp.float32)],
        compiler_params=pltpu.CompilerParams(
            dimension_semantics=("parallel",)),
        cost_estimate=pl.CostEstimate(
            flops=flops,
            transcendentals=transcendentals,
            bytes_accessed=bytes_accessed),
    )(x1, x2, w1, b1, w2, b2, w3, b3)

    return out[:B, :dim4]


def init_params(key, dim1, dim3, dim4):
    """Deterministic synthetic init mirroring the module's __init__ shapes.
    fc1/fc2 weights: xavier-normal; biases: uniform(+-1/sqrt(fan_in));
    fc3 weight: uniform(+-1/sqrt(fan_in)) (PyTorch default-ish).
    Weights are stored transposed vs. PyTorch: (in, out)."""
    k = jax.random.split(key, 6)
    in1, out1 = dim1 * 6, dim3 * 8
    in2, out2 = dim3 * 8, dim3 * 2
    in3, out3 = dim3 * 2, dim4

    def xavier_normal(k, fan_in, fan_out):
        std = (2.0 / (fan_in + fan_out)) ** 0.5
        return std * jax.random.normal(k, (fan_in, fan_out), jnp.float32)

    def uniform(k, shape, bound):
        return jax.random.uniform(k, shape, jnp.float32, -bound, bound)

    return {
        "w1": xavier_normal(k[0], in1, out1),
        "b1": uniform(k[1], (1, out1), 1.0 / in1 ** 0.5),
        "w2": xavier_normal(k[2], in2, out2),
        "b2": uniform(k[3], (1, out2), 1.0 / in2 ** 0.5),
        "w3": uniform(k[4], (in3, out3), 1.0 / in3 ** 0.5),
        "b3": uniform(k[5], (1, out3), 1.0 / in3 ** 0.5),
    }


def reference_forward(x1, x2, params):
    """Plain-JAX f32 reference matching the PyTorch semantics."""
    x = jnp.concatenate(
        [x1, x2, jnp.sin(x1), jnp.cos(x1), jnp.sin(x2), jnp.cos(x2)], axis=1)
    h1 = jax.nn.relu(x @ params["w1"] + params["b1"])   # self.tanh == nn.ReLU()
    h2 = jax.nn.relu(h1 @ params["w2"] + params["b2"])
    return h2 @ params["w3"] + params["b3"]


if __name__ == "__main__":
    # Small shapes consistent with the module: dim1=32, dim3=16, dim4=8, B=8.
    B, dim1, dim3, dim4 = 8, 32, 16, 8

    key = jax.random.PRNGKey(0)
    kx1, kx2, kp = jax.random.split(key, 3)
    x1 = jax.random.normal(kx1, (B, dim1), jnp.float32)
    x2 = jax.random.normal(kx2, (B, dim1), jnp.float32)
    params = init_params(kp, dim1, dim3, dim4)

    prep = prepare_params(params, compute_dtype=jnp.bfloat16)
    out = affinity_merge_forward(x1, x2, prep)
    out = jax.block_until_ready(out)

    ref = reference_forward(x1, x2, params)
    assert out.shape == (B, dim4), out.shape
    max_err = float(jnp.max(jnp.abs(out - ref)))
    # bf16 matmul operands with f32 accumulation -> slightly looser tolerance.
    assert jnp.allclose(out, ref, atol=5e-2, rtol=5e-2), max_err

    print("KERNEL_OK")
</pallas_src>

<mosaic_0001>
module attributes {stable_mosaic.version = 11 : i64} {
  func.func @_affinity_kernel(%arg0: i32, %arg1: memref<8x32xf32, #tpu.memory_space<vmem>>, %arg2: memref<8x32xf32, #tpu.memory_space<vmem>>, %arg3: memref<192x128xbf16, #tpu.memory_space<vmem>>, %arg4: memref<1x128xf32, #tpu.memory_space<vmem>>, %arg5: memref<128x128xbf16, #tpu.memory_space<vmem>>, %arg6: memref<1x128xf32, #tpu.memory_space<vmem>>, %arg7: memref<128x128xbf16, #tpu.memory_space<vmem>>, %arg8: memref<1x128xf32, #tpu.memory_space<vmem>>, %arg9: memref<8x128xf32, #tpu.memory_space<vmem>>, %arg10: memref<8x192xf32, #tpu.memory_space<vmem>>) attributes {dimension_semantics = [#tpu.dimension_semantics<parallel>], iteration_bounds = array<i64: 1>, scalar_prefetch = 0 : i64, scratch_operands = 1 : i64, tpu.core_type = #tpu.core_type<tc>, window_params = [{transform_indices = @transform_0, window_bounds = array<i64: 8, 32>}, {transform_indices = @transform_1, window_bounds = array<i64: 8, 32>}, {pipeline_mode = #tpu.pipeline_mode<synchronous>, transform_indices = @transform_2, window_bounds = array<i64: 192, 128>}, {pipeline_mode = #tpu.pipeline_mode<synchronous>, transform_indices = @transform_3, window_bounds = array<i64: 1, 128>}, {pipeline_mode = #tpu.pipeline_mode<synchronous>, transform_indices = @transform_4, window_bounds = array<i64: 128, 128>}, {pipeline_mode = #tpu.pipeline_mode<synchronous>, transform_indices = @transform_5, window_bounds = array<i64: 1, 128>}, {pipeline_mode = #tpu.pipeline_mode<synchronous>, transform_indices = @transform_6, window_bounds = array<i64: 128, 128>}, {pipeline_mode = #tpu.pipeline_mode<synchronous>, transform_indices = @transform_7, window_bounds = array<i64: 1, 128>}, {transform_indices = @transform_8, window_bounds = array<i64: 8, 128>}]} {
    %c0 = arith.constant 0 : index
    %c0_0 = arith.constant 0 : index
    %0 = vector.load %arg1[%c0, %c0_0] : memref<8x32xf32, #tpu.memory_space<vmem>>, vector<8x32xf32>
    %c0_1 = arith.constant 0 : index
    %c0_2 = arith.constant 0 : index
    %1 = vector.load %arg10[%c0_1, %c0_2] : memref<8x192xf32, #tpu.memory_space<vmem>>, vector<8x32xf32>
    tpu.vector_store %arg10[%c0_1, %c0_2], %0 {strides = array<i32>} : memref<8x192xf32, #tpu.memory_space<vmem>>, vector<8x32xf32>,
    %c0_3 = arith.constant 0 : index
    %c0_4 = arith.constant 0 : index
    %2 = vector.load %arg2[%c0_3, %c0_4] : memref<8x32xf32, #tpu.memory_space<vmem>>, vector<8x32xf32>
    %c0_5 = arith.constant 0 : index
    %c32 = arith.constant 32 : index
    %3 = vector.load %arg10[%c0_5, %c32] : memref<8x192xf32, #tpu.memory_space<vmem>>, vector<8x32xf32>
    tpu.vector_store %arg10[%c0_5, %c32], %2 {strides = array<i32>} : memref<8x192xf32, #tpu.memory_space<vmem>>, vector<8x32xf32>,
    %c0_6 = arith.constant 0 : index
    %c0_7 = arith.constant 0 : index
    %4 = vector.load %arg10[%c0_6, %c0_7] : memref<8x192xf32, #tpu.memory_space<vmem>>, vector<8x64xf32>
    %5 = math.sin %4 : vector<8x64xf32>
    %c0_8 = arith.constant 0 : index
    %c64 = arith.constant 64 : index
    %6 = vector.load %arg10[%c0_8, %c64] : memref<8x192xf32, #tpu.memory_space<vmem>>, vector<8x64xf32>
    tpu.vector_store %arg10[%c0_8, %c64], %5 {strides = array<i32>} : memref<8x192xf32, #tpu.memory_space<vmem>>, vector<8x64xf32>,
    %7 = math.cos %4 : vector<8x64xf32>
    %c0_9 = arith.constant 0 : index
    %c128 = arith.constant 128 : index
    %8 = vector.load %arg10[%c0_9, %c128] : memref<8x192xf32, #tpu.memory_space<vmem>>, vector<8x64xf32>
    tpu.vector_store %arg10[%c0_9, %c128], %7 {strides = array<i32>} : memref<8x192xf32, #tpu.memory_space<vmem>>, vector<8x64xf32>,
    %c0_10 = arith.constant 0 : index
    %c0_11 = arith.constant 0 : index
    %9 = vector.load %arg10[%c0_10, %c0_11] : memref<8x192xf32, #tpu.memory_space<vmem>>, vector<8x192xf32>
    %10 = arith.truncf %9 : vector<8x192xf32> to vector<8x192xbf16>
    %c0_12 = arith.constant 0 : index
    %c0_13 = arith.constant 0 : index
    %11 = vector.load %arg3[%c0_12, %c0_13] : memref<192x128xbf16, #tpu.memory_space<vmem>>, vector<192x128xbf16>
    %cst = arith.constant dense<0.000000e+00> : vector<8x128xf32>
    %12 = tpu.matmul %10, %11, %cst {dimension_numbers = #tpu.dot_dimension_numbers<[1], [0], [0], [1], [0, 0, 1, 1], [], []>} : vector<8x192xbf16>, vector<192x128xbf16>, vector<8x128xf32> -> vector<8x128xf32>
    %c0_14 = arith.constant 0 : index
    %c0_15 = arith.constant 0 : index
    %13 = vector.load %arg4[%c0_14, %c0_15] : memref<1x128xf32, #tpu.memory_space<vmem>>, vector<1x128xf32>
    %14 = vector.broadcast %13 : vector<1x128xf32> to vector<8x128xf32>
    %15 = arith.addf %12, %14 : vector<8x128xf32>
    %cst_16 = arith.constant 0.000000e+00 : f32
    %16 = vector.broadcast %cst_16 : f32 to vector<8x128xf32>
    %17 = arith.maximumf %15, %16 : vector<8x128xf32>
    %18 = arith.truncf %17 : vector<8x128xf32> to vector<8x128xbf16>
    %c0_17 = arith.constant 0 : index
    %c0_18 = arith.constant 0 : index
    %19 = vector.load %arg5[%c0_17, %c0_18] : memref<128x128xbf16, #tpu.memory_space<vmem>>, vector<128x128xbf16>
    %cst_19 = arith.constant dense<0.000000e+00> : vector<8x128xf32>
    %20 = tpu.matmul %18, %19, %cst_19 {dimension_numbers = #tpu.dot_dimension_numbers<[1], [0], [0], [1], [0, 0, 1, 1], [], []>} : vector<8x128xbf16>, vector<128x128xbf16>, vector<8x128xf32> -> vector<8x128xf32>
    %c0_20 = arith.constant 0 : index
    %c0_21 = arith.constant 0 : index
    %21 = vector.load %arg6[%c0_20, %c0_21] : memref<1x128xf32, #tpu.memory_space<vmem>>, vector<1x128xf32>
    %22 = vector.broadcast %21 : vector<1x128xf32> to vector<8x128xf32>
    %23 = arith.addf %20, %22 : vector<8x128xf32>
    %cst_22 = arith.constant 0.000000e+00 : f32
    %24 = vector.broadcast %cst_22 : f32 to vector<8x128xf32>
    %25 = arith.maximumf %23, %24 : vector<8x128xf32>
    %26 = arith.truncf %25 : vector<8x128xf32> to vector<8x128xbf16>
    %c0_23 = arith.constant 0 : index
    %c0_24 = arith.constant 0 : index
    %27 = vector.load %arg7[%c0_23, %c0_24] : memref<128x128xbf16, #tpu.memory_space<vmem>>, vector<128x128xbf16>
    %cst_25 = arith.constant dense<0.000000e+00> : vector<8x128xf32>
    %28 = tpu.matmul %26, %27, %cst_25 {dimension_numbers = #tpu.dot_dimension_numbers<[1], [0], [0], [1], [0, 0, 1, 1], [], []>} : vector<8x128xbf16>, vector<128x128xbf16>, vector<8x128xf32> -> vector<8x128xf32>
    %c0_26 = arith.constant 0 : index
    %c0_27 = arith.constant 0 : index
    %29 = vector.load %arg8[%c0_26, %c0_27] : memref<1x128xf32, #tpu.memory_space<vmem>>, vector<1x128xf32>
    %30 = vector.broadcast %29 : vector<1x128xf32> to vector<8x128xf32>
    %31 = arith.addf %28, %30 : vector<8x128xf32>
    %c0_28 = arith.constant 0 : index
    %c0_29 = arith.constant 0 : index
    %32 = vector.load %arg9[%c0_28, %c0_29] : memref<8x128xf32, #tpu.memory_space<vmem>>, vector<8x128xf32>
    tpu.vector_store %arg9[%c0_28, %c0_29], %31 {strides = array<i32>} : memref<8x128xf32, #tpu.memory_space<vmem>>, vector<8x128xf32>,
    return
  }
  func.func @transform_0(%arg0: i32) -> (i32, i32) {
    %c0_i32 = arith.constant 0 : i32
    %c0_i32_0 = arith.constant 0 : i32
    return %arg0, %c0_i32 : i32, i32
  }
  func.func @transform_1(%arg0: i32) -> (i32, i32) {
    %c0_i32 = arith.constant 0 : i32
    %c0_i32_0 = arith.constant 0 : i32
    return %arg0, %c0_i32 : i32, i32
  }
  func.func @transform_2(%arg0: i32) -> (i32, i32) {
    %c0_i32 = arith.constant 0 : i32
    %c0_i32_0 = arith.constant 0 : i32
    %c0_i32_1 = arith.constant 0 : i32
    return %c0_i32, %c0_i32_0 : i32, i32
  }
  func.func @transform_3(%arg0: i32) -> (i32, i32) {
    %c0_i32 = arith.constant 0 : i32
    %c0_i32_0 = arith.constant 0 : i32
    %c0_i32_1 = arith.constant 0 : i32
    return %c0_i32, %c0_i32_0 : i32, i32
  }
  func.func @transform_4(%arg0: i32) -> (i32, i32) {
    %c0_i32 = arith.constant 0 : i32
    %c0_i32_0 = arith.constant 0 : i32
    %c0_i32_1 = arith.constant 0 : i32
    return %c0_i32, %c0_i32_0 : i32, i32
  }
  func.func @transform_5(%arg0: i32) -> (i32, i32) {
    %c0_i32 = arith.constant 0 : i32
    %c0_i32_0 = arith.constant 0 : i32
    %c0_i32_1 = arith.constant 0 : i32
    return %c0_i32, %c0_i32_0 : i32, i32
  }
  func.func @transform_6(%arg0: i32) -> (i32, i32) {
    %c0_i32 = arith.constant 0 : i32
    %c0_i32_0 = arith.constant 0 : i32
    %c0_i32_1 = arith.constant 0 : i32
    return %c0_i32, %c0_i32_0 : i32, i32
  }
  func.func @transform_7(%arg0: i32) -> (i32, i32) {
    %c0_i32 = arith.constant 0 : i32
    %c0_i32_0 = arith.constant 0 : i32
    %c0_i32_1 = arith.constant 0 : i32
    return %c0_i32, %c0_i32_0 : i32, i32
  }
  func.func @transform_8(%arg0: i32) -> (i32, i32) {
    %c0_i32 = arith.constant 0 : i32
    %c0_i32_0 = arith.constant 0 : i32
    return %arg0, %c0_i32 : i32, i32
  }
}

</mosaic_0001>

<bundles_post_ra>
// kernel: tpu_custom_call.1
= control target key start
LH: loop header
LB: loop body
LE: loop exit
PB: predicated region body
PF: predicated region fallthrough
CT: control target
= control target key end

     0   :  { %13 = vsyncpa [#allocation4], 0  ;;  %s1223_s0 = inlined_call_operand.hbm [shape: f32[8,32], index: 0, kind: input, shape index: {}]   ;;  %s1224_s1 = inlined_call_operand.hbm [shape: f32[8,32], index: 1, kind: input, shape index: {}]   ;;  %s1225_s2 = inlined_call_operand.hbm [shape: bf16[192,128], index: 2, kind: input, shape index: {}]   ;;  %s1226_s3 = inlined_call_operand.vmem [shape: f32[1,128], index: 3, kind: input, shape index: {}]   ;;  %s1227_s4 = inlined_call_operand.hbm [shape: bf16[128,128], index: 4, kind: input, shape index: {}]   ;;  %s1228_s5 = inlined_call_operand.vmem [shape: f32[1,128], index: 5, kind: input, shape index: {}]   ;;  %s1229_s6 = inlined_call_operand.hbm [shape: bf16[128,128], index: 6, kind: input, shape index: {}]   ;;  %s1230_s7 = inlined_call_operand.vmem [shape: f32[1,128], index: 7, kind: input, shape index: {}]   ;;  %s1231_s8 = inlined_call_operand.hbm [shape: f32[8,128], index: 8, kind: output, shape index: {}]  }
   0x1   :  { %14 = vsyncpa [#allocation7], 0 }
   0x2   :  { %15 = vsyncpa [#allocation10], 0  ;;  %s33_s29 = sshll.u32 %s1224_s1, 4  ;;  %s34_s29 = int_to_ptr.hbm [resolvable:$true] %s33_s29 }
   0x3   :  { %16 = vsyncpa [#allocation5], 0  ;;  %s1070_s30 = smov [#allocation6]   ;;  %s58_s12 = sshll.u32 %s1227_s4, 4  ;;  %s59_s12 = int_to_ptr.hbm [resolvable:$true] %s58_s12 }
   0x4   :  { %s35_s9 = sshll.u32 %s1070_s30, 4  ;;  %s1071_s13 = smov [#allocation9]   ;;  %s36_s9 = int_to_ptr.vmem [resolvable:$true] %s35_s9 }
   0x5   :  { %38 = dma.hbm_to_vmem [thread:$0]  %s34_s29, 128, %s36_s9, [#allocation7]  }
   0x6   :  { %s60_s14 = sshll.u32 %s1071_s13, 4  ;;  %s22_s17 = sshll.u32 %s1223_s0, 4  ;;  %s61_s14 = int_to_ptr.vmem [resolvable:$true] %s60_s14  ;;  %s23_s17 = int_to_ptr.hbm [resolvable:$true] %s22_s17 }
   0x7   :  { %s1072_s1 = smov 64   ;;  %s1073_s18 = smov 4  }
   0x8   :  { %66 = dma.hbm_to_vmem [thread:$0]  %s59_s12, 1024, %s61_s14, [#allocation10], %s1072_s1, %s1072_s1, %s1073_s18  }
   0x9   :  { %s43_s21 = sshll.u32 %s1225_s2, 4  ;;  %s1074_s22 = smov [#allocation3]   ;;  %s44_s21 = int_to_ptr.hbm [resolvable:$true] %s43_s21 }
   0xa   :  { %s24_s4 = sshll.u32 %s1074_s22, 4  ;;  %s1075_s23 = smov [#allocation8]   ;;  %s25_s4 = int_to_ptr.vmem [resolvable:$true] %s24_s4 }
   0xb   :  { %27 = dma.hbm_to_vmem [thread:$0]  %s23_s17, 128, %s25_s4, [#allocation4]  }
   0xc   :  { %s45_s24 = sshll.u32 %s1075_s23, 4  ;;  %s73_s26 = sshll.u32 %s1229_s6, 4  ;;  %s46_s24 = int_to_ptr.vmem [resolvable:$true] %s45_s24  ;;  %s74_s26 = int_to_ptr.hbm [resolvable:$true] %s73_s26 }
   0xd   :  { %51 = dma.hbm_to_vmem [thread:$0]  %s44_s21, 1536, %s46_s24, [#allocation7], %s1072_s1, %s1072_s1, %s1073_s18  }
   0xe   :  { %s1076_s27 = smov [#allocation11]  }
   0xf   :  { %s75_s28 = sshll.u32 %s1076_s27, 4  ;;  %s76_s28 = int_to_ptr.vmem [resolvable:$true] %s75_s28 }
  0x10   :  { %81 = dma.hbm_to_vmem [thread:$0]  %s74_s26, 1024, %s76_s28, [#allocation10], %s1072_s1, %s1072_s1, %s1073_s18  }
  0x11   :  { %1062 = dma.done.wait [#allocation4], 128  }
  0x12   :  { %1063 = vsyncadd [#allocation4], 4294967168 }
  0x13   :  { %1064 = dma.done.wait [#allocation7], 1664  }
  0x14   :  { %1065 = vsyncadd [#allocation7], 4294965632 }
  0x15   :  { %1066 = dma.done.wait [#allocation10], 2048  }
  0x16   :  { %1067 = vsyncadd [#allocation10], 4294965248  ;;  %v108_v0 = vld [vmem:[#allocation6] sm:$0xff]  ;;  %s1077_s2 = smov 32   ;;  %vm106_vm0 = vcmask 261120   ;;  %v105_v1 = vld [vmem:[#allocation3] sm:$0xff] }
  0x17   :  { %110 = vrot.lane.b32.xlu0 %v108_v0, %s1077_s2  ;;  %107 = vst.msk [vmem:[#allocation2] sm:$0xff] %vm106_vm0, %v105_v1  ;;  %v882_v2 = vld [vmem:[#allocation8 + $0x58] sm:$0xff]  ;;  %v881_v3 = vld [vmem:[#allocation8 + $0x50] sm:$0xff]  ;;  %vm113_vm1 = vcmask 523520   ;;  %v1078_v17 = vmov 683565275  }
  0x18   :  { %557 = vmatpush.bf16.msra.mxu1 %v882_v2  ;;  %v1079_v19 = vmov 2475754826   ;;  %v1080_v22 = vmov 2131351028   ;;  %v1081_v25 = vmov 2102212464  }
  0x19   :  { %v1082_v28 = vmov 920167782   ;;  %v1083_v31 = vmov 1326507024   ;;  %v1084_v1 = vmov 0   ;;  %s1085_s11 = smov [#allocation12]  }
  0x1a   :  { %s738_s12 = sshll.u32 %s1085_s11, 4  ;;  %s740_s15 = sshll.u32 %s1231_s8, 4  ;;  %s739_s12 = int_to_ptr.vmem [resolvable:$true] %s738_s12  ;;  %s741_s15 = int_to_ptr.hbm [resolvable:$true] %s740_s15 }
  0x1c   :  { %558 = vmatpush.bf16.msra.mxu1 %v881_v3 }
  0x89   :  { %v111_v4 = vpop.permute.xlu0 %110 }
  0x8a   :  { %114 = vst.msk [vmem:[#allocation2] sm:$0xff] %vm113_vm1, %v111_v4 }
  0x91   :  { %v1152_v5 = vld [vmem:[#allocation2] sm:$0xff] }
  0x92   :  { %v119_v6 = vand.u32 2139095040, %v1152_v5  ;;  %v116_v9 = vand.u32 2147483647, %v1152_v5  ;;  %vm118_vm14 = vcmp.lt.s32.totalorder %v1152_v5, 0 }
  0x94   :  { %v120_v7 = vshrl.u32 %v119_v6, 23  ;;  %v123_v11 = vand.u32 8388607, %v116_v9  ;;  %vm117_vm15 = vcmp.le.f32.partialorder %v116_v9, 0.7853982 }
  0x96   :  { %v752_v8 = vadd.s32 4294967169, %v120_v7  ;;  %v124_v15 = vor.u32 8388608, %v123_v11 }
  0x98   :  { %v126_v10 = vadd.s32 1, %v752_v8  ;;  %v1169_v38 = vshll.u32 %v124_v15, 8 }
  0x9a   :  { %vm127_vm2 = vcmp.gt.s32.totalorder %v126_v10, 0  ;;  %v165_v47 = vand.u32 65535, %v1169_v38  ;;  %v166_v48 = vshrl.u32 %v1169_v38, 16 }
  0x9b   :  { %v128_v12 = vsel %vm127_vm2, %v126_v10, 0 }
  0x9c   :  { %v130_v13 = vand.u32 31, %v128_v12  ;;  %v1160_v16 = vshrl.u32 %v128_v12, 5 }
  0x9e   :  { %v1158_v14 = vsub.s32 32, %v130_v13  ;;  %v133_v18 = vshll.u32 %v1078_v17, %v130_v13  ;;  %v136_v20 = vshll.u32 %v1079_v19, %v130_v13  ;;  %v139_v24 = vshll.u32 %v1080_v22, %v130_v13 }
  0x9f   :  { %v142_v27 = vshll.u32 %v1081_v25, %v130_v13  ;;  %v145_v30 = vshll.u32 %v1082_v28, %v130_v13  ;;  %vm148_vm3 = vcmp.lt.s32.totalorder %v1160_v16, 1  ;;  %vm151_vm4 = vcmp.lt.s32.totalorder %v1160_v16, 4 }
  0xa0   :  { %v134_v21 = vshrl.u32 %v1079_v19, %v1158_v14  ;;  %v137_v23 = vshrl.u32 %v1080_v22, %v1158_v14  ;;  %v140_v26 = vshrl.u32 %v1081_v25, %v1158_v14  ;;  %v143_v29 = vshrl.u32 %v1082_v28, %v1158_v14 }
  0xa1   :  { %v146_v32 = vshrl.u32 %v1083_v31, %v1158_v14  ;;  %vm150_vm5 = vcmp.lt.s32.totalorder %v1160_v16, 3  ;;  %vm149_vm6 = vcmp.lt.s32.totalorder %v1160_v16, 2  ;;  %v132_v12 = vshrl.u32 %v1078_v17, %v1158_v14 }
  0xa2   :  { %v135_v33 = vor.u32 %v134_v21, %v133_v18  ;;  %v138_v34 = vor.u32 %v137_v23, %v136_v20  ;;  %v141_v35 = vor.u32 %v140_v26, %v139_v24  ;;  %v144_v36 = vor.u32 %v143_v29, %v142_v27 }
  0xa3   :  { %v147_v37 = vor.u32 %v146_v32, %v145_v30 }
  0xa4   :  { %v156_v39 = vsel %vm148_vm3, %v135_v33, %v138_v34  ;;  %v160_v40 = vsel %vm148_vm3, %v138_v34, %v141_v35  ;;  %v157_v41 = vsel %vm151_vm4, %v144_v36, 920167782  ;;  %v153_v8 = vsel %vm151_vm4, %v141_v35, 2102212464 }
  0xa5   :  { %v161_v42 = vsel %vm151_vm4, %v147_v37, 1326507024  ;;  %v158_v43 = vsel %vm150_vm5, %v141_v35, %v157_v41  ;;  %v152_v21 = vsel %vm148_vm3, %v132_v12, %v135_v33  ;;  %v154_v22 = vsel %vm150_vm5, %v138_v34, %v153_v8 }
  0xa6   :  { %v162_v44 = vsel %vm150_vm5, %v144_v36, %v161_v42  ;;  %v159_v45 = vsel %vm149_vm6, %v156_v39, %v158_v43  ;;  %v155_v14 = vsel %vm149_vm6, %v152_v21, %v154_v22  ;;  %v874_v21 = vld [vmem:[#allocation8 + $0x18] sm:$0xff] }
  0xa7   :  { %v163_v46 = vsel %vm149_vm6, %v160_v40, %v162_v44  ;;  %v189_v51 = vand.u32 65535, %v159_v45  ;;  %v190_v52 = vshrl.u32 %v159_v45, 16  ;;  %v209_v30 = vmul.u32 %v1169_v38, %v155_v14 }
  0xa8   :  { %v167_v49 = vand.u32 65535, %v163_v46  ;;  %v168_v50 = vshrl.u32 %v163_v46, 16  ;;  %vm431_vm6 = vcmask 523264  }
  0xa9   :  { %v192_v55 = vmul.u32 %v190_v52, %v165_v47  ;;  %v193_v56 = vmul.u32 %v189_v51, %v166_v48  ;;  %v191_v60 = vmul.u32 %v189_v51, %v165_v47  ;;  %v194_v0 = vmul.u32 %v190_v52, %v166_v48  ;;  %v879_v51 = vld [vmem:[#allocation8 + $0x40] sm:$0xff] }
  0xaa   :  { %v170_v53 = vmul.u32 %v168_v50, %v165_v47  ;;  %v171_v54 = vmul.u32 %v167_v49, %v166_v48  ;;  %v169_v57 = vmul.u32 %v167_v49, %v165_v47  ;;  %v172_v59 = vmul.u32 %v168_v50, %v166_v48  ;;  %v880_v49 = vld [vmem:[#allocation8 + $0x48] sm:$0xff] }
  0xab   :  { %v195_v61 = vshll.u32 %v192_v55, 16  ;;  %v197_v3 = vshll.u32 %v193_v56, 16  ;;  %v196_v19 = vshrl.u32 %v192_v55, 16  ;;  %v198_v25 = vshrl.u32 %v193_v56, 16  ;;  %559 = vmatpush.bf16.msra.mxu1 %v880_v49  ;;  %v896_v49 = vld [vmem:[#allocation11 + $0x28] sm:$0xff] }
  0xac   :  { %v173_v58 = vshll.u32 %v170_v53, 16  ;;  %v175_v62 = vshll.u32 %v171_v54, 16  ;;  %v174_v13 = vshrl.u32 %v170_v53, 16  ;;  %v176_v23 = vshrl.u32 %v171_v54, 16 }
  0xad   :  { %vm199_vm8 = vc.u32 %v191_v60, %v195_v61  ;;  %v201_v4 = vadd.s32 %v195_v61, %v191_v60  ;;  %v877_v61 = vld [vmem:[#allocation8 + $0x30] sm:$0xff] }
  0xae   :  { %vm177_vm7 = vc.u32 %v169_v57, %v173_v58  ;;  %v179_v63 = vadd.s32 %v173_v58, %v169_v57  ;;  %v200_v7 = vsel %vm199_vm8, 1, %v1084_v1  ;;  %vm275_vm8 = vcmask 1048064  }
  0xaf   :  { %v178_v2 = vsel %vm177_vm7, 1, %v1084_v1  ;;  %v202_v11 = vadd.s32 %v200_v7, %v194_v0  ;;  %vm203_vm10 = vc.u32 %v201_v4, %v197_v3  ;;  %v205_v28 = vadd.s32 %v201_v4, %v197_v3  ;;  %560 = vmatpush.bf16.msra.mxu1 %v879_v51  ;;  %v876_v3 = vld [vmem:[#allocation8 + $0x28] sm:$0xff]  ;;  %v894_v51 = vld [vmem:[#allocation11 + $0x18] sm:$0xff] }
  0xb0   :  { %v180_v6 = vadd.s32 %v178_v2, %v172_v59  ;;  %vm181_vm9 = vc.u32 %v179_v63, %v175_v62  ;;  %v204_v18 = vsel %vm203_vm10, 1, %v1084_v1  ;;  %v878_v59 = vld [vmem:[#allocation8 + $0x38] sm:$0xff]  ;;  %vm259_vm7 = vweird.f32 %v1152_v5 }
  0xb1   :  { %v182_v10 = vsel %vm181_vm9, 1, %v1084_v1  ;;  %v206_v20 = vadd.s32 %v204_v18, %v202_v11  ;;  %540 = vmatpush.bf16.msra.mxu0 %v878_v59  ;;  %v875_v11 = vld [vmem:[#allocation8 + $0x20] sm:$0xff] }
  0xb2   :  { %v184_v15 = vadd.s32 %v182_v10, %v180_v6 }
  0xb3   :  { %v207_v26 = vadd.s32 %v206_v20, %v196_v19 }
  0xb4   :  { %v185_v24 = vadd.s32 %v184_v15, %v174_v13 }
  0xb5   :  { %v208_v17 = vadd.s32 %v207_v26, %v198_v25  ;;  %541 = vmatpush.bf16.msra.mxu0 %v877_v61  ;;  %v873_v25 = vld [vmem:[#allocation8 + $0x10] sm:$0xff]  ;;  %v891_v61 = vld [vmem:[#allocation11] sm:$0xff] }
  0xb6   :  { %v186_v27 = vadd.s32 %v185_v24, %v176_v23 }
  0xb7   :  { %v212_v29 = vadd.s32 1, %v208_v17 }
  0xb8   :  { %vm211_vm11 = vc.u32 %v186_v27, %v205_v28  ;;  %v210_v16 = vadd.s32 %v205_v28, %v186_v27 }
  0xb9   :  { %v213_v31 = vsel %vm211_vm11, %v212_v29, %v208_v17  ;;  %542 = vmatpush.bf16.msra.mxu0 %v876_v3 }
  0xba   :  { %v214_v32 = vadd.s32 %v213_v31, %v209_v30 }
  0xbc   :  { %v215_v33 = vadd.s32 536870912, %v214_v32 }
  0xbd   :  { %543 = vmatpush.bf16.msra.mxu0 %v875_v11 }
  0xbe   :  { %v216_v35 = vshrl.u32 %v215_v33, 30 }
  0xc0   :  { %v217_v36 = vshll.u32 %v216_v35, 30  ;;  %v240_v57 = vsub.s32 4, %v216_v35 }
  0xc1   :  { %544 = vmatpush.bf16.msra.mxu0 %v874_v21 }
  0xc2   :  { %v218_v34 = vsub.s32 %v214_v32, %v217_v36  ;;  %v241_v0 = vsel %vm118_vm14, %v240_v57, %v216_v35  ;;  %v872_v35 = vld [vmem:[#allocation8 + $0x8] sm:$0xff]  ;;  %v871_v36 = vld [vmem:[#allocation8] sm:$0xff] }
  0xc3   :  { %v243_v4 = vsel %vm117_vm15, 0, %v241_v0 }
  0xc4   :  { %vm219_vm12 = vcmp.lt.s32.totalorder %v218_v34, 0  ;;  %v220_v37 = vsub.s32 0, %v218_v34  ;;  %v260_v10 = vadd.s32 3, %v243_v4  ;;  %v421_v19 = vand.u32 3, %v243_v4  ;;  %v917_v4 = vld [vmem:[%s1230_s7] ss:$0 sm:$0xff] }
  0xc5   :  { %545 = vmatpush.bf16.msra.mxu0 %v873_v25 }
  0xc6   :  { %v221_v39 = vsel %vm219_vm12, %v220_v37, %v218_v34  ;;  %v261_v20 = vand.u32 3, %v260_v10  ;;  %vm422_vm0 = vcmp.lt.s32.totalorder %v421_v19, 2  ;;  %vm423_vm1 = vcmp.eq.s32.totalorder %v421_v19, 0 }
  0xc7   :  { %v222_v40 = vclz %v221_v39  ;;  %vm426_vm2 = vcmp.eq.s32.totalorder %v421_v19, 2  ;;  %v888_v39 = vld [vmem:[#allocation9 + $0x28] sm:$0xff] }
  0xc8   :  { %vm262_vm3 = vcmp.lt.s32.totalorder %v261_v20, 2  ;;  %vm263_vm4 = vcmp.eq.s32.totalorder %v261_v20, 0  ;;  %vm266_vm5 = vcmp.eq.s32.totalorder %v261_v20, 2 }
  0xc9   :  { %v753_v41 = vadd.s32 4294967294, %v222_v40  ;;  %546 = vmatpush.bf16.msra.mxu0 %v872_v35  ;;  %v887_v40 = vld [vmem:[#allocation9 + $0x20] sm:$0xff] }
  0xcb   :  { %vm754_vm13 = vcmp.lt.s32.totalorder %v753_v41, 0 }
  0xcc   :  { %v225_v42 = vsel %vm754_vm13, 0, %v753_v41 }
  0xcd   :  { %v226_v43 = vsub.s32 32, %v225_v42  ;;  %v230_v44 = vsub.s32 4294967266, %v225_v42  ;;  %v227_v45 = vshll.u32 %v218_v34, %v225_v42  ;;  %547 = vmatpush.bf16.msra.mxu0 %v871_v36  ;;  %v890_v34 = vld [vmem:[#allocation9 + $0x38] sm:$0xff] }
  0xce   :  { %636 = vmatpush.bf16.msra.mxu2 %v890_v34 }
  0xcf   :  { %v228_v46 = vshrl.u32 %v210_v16, %v226_v43  ;;  %v231_v47 = vadd.s32 127, %v230_v44  ;;  %v886_v16 = vld [vmem:[#allocation9 + $0x18] sm:$0xff]  ;;  %v885_v43 = vld [vmem:[#allocation9 + $0x10] sm:$0xff] }
  0xd1   :  { %v229_v38 = vor.u32 %v228_v46, %v227_v45  ;;  %v232_v48 = vshll.u32 %v231_v47, 23  ;;  %v884_v46 = vld [vmem:[#allocation9 + $0x8] sm:$0xff]  ;;  %v883_v47 = vld [vmem:[#allocation9] sm:$0xff] }
  0xd3   :  { %v233_v50 = vor.u32 4788187, %v232_v48  ;;  %v236_v53 = vcvt.s32.f32 %v229_v38  ;;  %v898_v38 = vld [vmem:[#allocation11 + $0x38] sm:$0xff]  ;;  %v897_v48 = vld [vmem:[#allocation11 + $0x30] sm:$0xff] }
  0xd4   :  { %719 = vmatpush.bf16.msra.mxu3 %v898_v38 }
  0xd5   :  { %v234_v52 = vand.u32 2147483647, %v233_v50  ;;  %v895_v50 = vld [vmem:[#allocation11 + $0x20] sm:$0xff] }
  0xd7   :  { %v237_v54 = vmul.f32 %v236_v53, %v234_v52  ;;  %v893_v52 = vld [vmem:[#allocation11 + $0x10] sm:$0xff]  ;;  %v915_v53 = vld [vmem:[%s1226_s3] ss:$0 sm:$0xff] }
  0xd8   :  { %720 = vmatpush.bf16.msra.mxu3 %v897_v48 }
  0xd9   :  { %v238_v55 = vxor.u32 2147483648, %v237_v54 }
  0xdb   :  { %v239_v56 = vsel %vm118_vm14, %v238_v55, %v237_v54 }
  0xdc   :  { %v242_v58 = vsel %vm117_vm15, %v1152_v5, %v239_v56  ;;  %v889_v5 = vld [vmem:[#allocation9 + $0x30] sm:$0xff]  ;;  %721 = vmatpush.bf16.msra.mxu3 %v896_v49 }
  0xdd   :  { %v244_v60 = vmul.f32 %v242_v58, %v242_v58  ;;  %637 = vmatpush.bf16.msra.mxu2 %v889_v5 }
  0xdf   :  { %v245_v62 = vmul.f32 -0.001358992, %v244_v60  ;;  %v252_v63 = vmul.f32 -0.00019511016, %v244_v60 }
  0xe0   :  { %722 = vmatpush.bf16.msra.mxu3 %v895_v50 }
  0xe1   :  { %v246_v1 = vadd.f32 0.041655596, %v245_v62  ;;  %v253_v2 = vadd.f32 0.008332121, %v252_v63  ;;  %638 = vmatpush.bf16.msra.mxu2 %v888_v39  ;;  %v916_v62 = vld [vmem:[%s1228_s5] ss:$0 sm:$0xff] }
  0xe3   :  { %v247_v6 = vmul.f32 %v246_v1, %v244_v60  ;;  %v254_v7 = vmul.f32 %v253_v2, %v244_v60 }
  0xe4   :  { %723 = vmatpush.bf16.msra.mxu3 %v894_v51 }
  0xe5   :  { %v248_v8 = vadd.f32 -0.4999988, %v247_v6  ;;  %v255_v9 = vadd.f32 -0.16666654, %v254_v7  ;;  %639 = vmatpush.bf16.msra.mxu2 %v887_v40 }
  0xe7   :  { %v249_v12 = vmul.f32 %v248_v8, %v244_v60  ;;  %v256_v13 = vmul.f32 %v255_v9, %v244_v60  ;;  %v892_v60 = vld [vmem:[#allocation11 + $0x8] sm:$0xff] }
  0xe8   :  { %724 = vmatpush.bf16.msra.mxu3 %v893_v52 }
  0xe9   :  { %v250_v15 = vadd.f32 1.0, %v249_v12  ;;  %v257_v18 = vadd.f32 1.0, %v256_v13  ;;  %640 = vmatpush.bf16.msra.mxu2 %v886_v16 }
  0xeb   :  { %v258_v22 = vmul.f32 %v257_v18, %v242_v58  ;;  %v267_v23 = vxor.u32 2147483648, %v250_v15 }
  0xec   :  { %725 = vmatpush.bf16.msra.mxu3 %v892_v60 }
  0xed   :  { %v264_v24 = vxor.u32 2147483648, %v258_v22  ;;  %v268_v27 = vsel %vm266_vm5, %v267_v23, %v258_v22  ;;  %v428_v14 = vsel %vm426_vm2, %v267_v23, %v258_v22  ;;  %641 = vmatpush.bf16.msra.mxu2 %v885_v43 }
  0xef   :  { %v265_v26 = vsel %vm263_vm4, %v250_v15, %v264_v24  ;;  %v425_v28 = vsel %vm423_vm1, %v250_v15, %v264_v24 }
  0xf0   :  { %v269_v17 = vsel %vm262_vm3, %v265_v26, %v268_v27  ;;  %v429_v29 = vsel %vm422_vm0, %v425_v28, %v428_v14  ;;  %726 = vmatpush.bf16.msra.mxu3 %v891_v61 }
  0xf1   :  { %v270_v30 = vsel %vm259_vm7, nan, %v269_v17  ;;  %v430_v31 = vsel %vm259_vm7, nan, %v429_v29  ;;  %642 = vmatpush.bf16.msra.mxu2 %v884_v46 }
  0xf2   :  { %272 = vrot.lane.b32.xlu0 %v270_v30, %s1072_s1  ;;  %432 = vst.msk [vmem:[#allocation2 + $0x8] sm:$0xff] %vm431_vm6, %v430_v31 }
  0xf5   :  { %643 = vmatpush.bf16.msra.mxu2 %v883_v47 }
  0xf9   :  { %v434_v32 = vld [vmem:[#allocation2 + $0x8] sm:$0xff] }
  0xfa   :  { %v436_v33 = vpack.c.bf16 %v434_v32, %v434_v32 }
  0xfc   :  { %806 = vmatmul.msk.bf16.vlgmr.msra.gmra.mxu1 %vm431_vm6, %v436_v33 }
 0x164   :  { %v273_v37 = vpop.permute.xlu0 %272 }
 0x165   :  { %276 = vst.msk [vmem:[#allocation2] sm:$0xff] %vm275_vm8, %v273_v37 }
 0x16c   :  { %v433_v41 = vld [vmem:[#allocation2] sm:$0xff] }
 0x16d   :  { %v435_v42 = vpack.c.bf16 %v433_v41, %v433_v41 }
 0x16f   :  { %548 = vmatmul.bf16.vlgmr.msra.gmra.mxu0 %v435_v42 }
 0x179   :  { %v562_v44 = vpop.f32.mrf.mxu1 }
 0x181   :  { %v564_v45 = vpop.f32.mrf.mxu1 }
 0x1ec   :  { %v549_v54 = vpop.f32.mrf.mxu0 }
 0x1ed   :  { %v550_v55 = vadd.f32 %v915_v53, %v549_v54 }
 0x1ef   :  { %v563_v56 = vadd.f32 %v562_v44, %v550_v55 }
 0x1f1   :  { %v566_v57 = vmax.f32 %v563_v56, 0.0 }
 0x1f3   :  { %v567_v58 = vpack.c.bf16 %v566_v57, %v566_v57 }
 0x1f4   :  { %v551_v59 = vpop.f32.mrf.mxu0 }
 0x1f5   :  { %644 = vmatmul.bf16.vlgmr.msra.gmra.mxu2 %v567_v58 }
 0x278   :  { %v645_v63 = vpop.f32.mrf.mxu2 }
 0x279   :  { %v646_v0 = vadd.f32 %v916_v62, %v645_v63 }
 0x27b   :  { %v649_v1 = vmax.f32 %v646_v0, 0.0 }
 0x27d   :  { %v650_v2 = vpack.c.bf16 %v649_v1, %v649_v1 }
 0x27f   :  { %727 = vmatmul.bf16.vlgmr.msra.gmra.mxu3 %v650_v2 }
 0x280   :  { %v647_v3 = vpop.f32.mrf.mxu2 }
 0x302   :  { %v728_v6 = vpop.f32.mrf.mxu3 }
 0x303   :  { %v729_v7 = vadd.f32 %v917_v4, %v728_v6 }
 0x305   :  { %732 = vst [vmem:[#allocation12] sm:$0xff] %v729_v7 }
 0x306   :  { %743 = dma.vmem_to_hbm [thread:$0]  %s739_s12, 128, %s741_s15, [#allocation5]  }
 0x30a   :  { %v730_v8 = vpop.f32.mrf.mxu3 }
 0x30b   :  { %1068 = dma.done.wait [#allocation5], 128  }
 0x30c   :  { %1069 = vsyncadd [#allocation5], 4294967168 }
 0x30d   :  { %748 = vsyncpa [#allocation4], 1 }
 0x30e   :  { %749 = vsyncpa [#allocation7], 1 }
 0x30f   :  { %750 = vsyncpa [#allocation10], 1 }
 0x310   :  { %751 = vsyncpa [#allocation5], 1 }

</bundles_post_ra>
